<compile_context>
chip_gen: v7x
topology: tpu7x:2x2x1
jax: 0.10.0
libtpu: 0.0.40
codegen_flags: <defaults>
</compile_context>

<pallas_src>
import math

import jax
import jax.numpy as jnp
from jax.experimental import pallas as pl
from jax.experimental.pallas import tpu as pltpu


def _round_up(a, b):
    return ((a + b - 1) // b) * b


# --------------------------------------------------------------------------
# Pallas kernel: out = x + gather(emb, t) @ W^T + b   (all operands padded
# to a lane-dense width; emb/W^T/b are VMEM-resident across the row grid)
# --------------------------------------------------------------------------
def _rte_kernel(x_ref, t_ref, emb_ref, wt_ref, b_ref, o_ref):
    tm = t_ref.shape[0]
    max_len = emb_ref.shape[0]

    # In-kernel gather via one-hot matmul (MXU): onehot (tm, max_len).
    t = t_ref[...]  # (tm, 1) int32
    pos = jax.lax.broadcasted_iota(jnp.int32, (tm, max_len), 1)
    onehot = jnp.where(pos == t, 1.0, 0.0).astype(jnp.float32)

    e = jnp.dot(onehot, emb_ref[...], preferred_element_type=jnp.float32)   # (tm, hid)
    y = jnp.dot(e, wt_ref[...], preferred_element_type=jnp.float32)         # (tm, hid)

    # Residual + bias in f32 on the VPU (b_ref broadcasts over rows).
    o_ref[...] = x_ref[...] + y + b_ref[...]


def rel_temporal_encoding(x, t, emb, w, b, *, tm_target=256):
    """x: (N, n_hid) f32, t: (N,) int32, emb: (max_len, n_hid),
    w: (n_hid, n_hid) PyTorch layout (out, in), b: (n_hid,).
    Returns (N, n_hid) = x + emb[t] @ w.T + b."""
    n, n_hid = x.shape
    max_len = emb.shape[0]

    # Lane-dense feature width and row tile.
    hid_pad = _round_up(n_hid, 128)
    tm = min(tm_target, _round_up(n, 8))
    n_pad = _round_up(n, tm)

    # Zero-pad everything (zeros contribute exactly nothing to the matmul).
    x_p = jnp.zeros((n_pad, hid_pad), jnp.float32).at[:n, :n_hid].set(x)
    t_p = jnp.zeros((n_pad, 1), jnp.int32).at[:n, 0].set(t.astype(jnp.int32))
    emb_p = jnp.zeros((max_len, hid_pad), jnp.float32).at[:, :n_hid].set(emb)
    wt_p = jnp.zeros((hid_pad, hid_pad), jnp.float32).at[:n_hid, :n_hid].set(w.T)
    b_p = jnp.zeros((1, hid_pad), jnp.float32).at[0, :n_hid].set(b)

    grid = (n_pad // tm,)

    out = pl.pallas_call(
        _rte_kernel,
        out_shape=jax.ShapeDtypeStruct((n_pad, hid_pad), jnp.float32),
        grid_spec=pltpu.PrefetchScalarGridSpec(
            num_scalar_prefetch=0,
            grid=grid,
            in_specs=[
                pl.BlockSpec((tm, hid_pad), lambda i: (i, 0)),        # x (streamed)
                pl.BlockSpec((tm, 1), lambda i: (i, 0)),              # t (streamed)
                pl.BlockSpec((max_len, hid_pad), lambda i: (0, 0)),   # emb (resident)
                pl.BlockSpec((hid_pad, hid_pad), lambda i: (0, 0)),   # W^T (resident)
                pl.BlockSpec((1, hid_pad), lambda i: (0, 0)),         # b (resident)
            ],
            out_specs=pl.BlockSpec((tm, hid_pad), lambda i: (i, 0)),
        ),
        compiler_params=pltpu.CompilerParams(
            dimension_semantics=("parallel",),   # row tiles are independent
        ),
    )(x_p, t_p, emb_p, wt_p, b_p)

    return out[:n, :n_hid]


# --------------------------------------------------------------------------
# Parameter construction (deterministic, mirrors PyTorch __init__)
# --------------------------------------------------------------------------
def build_params(n_hid, max_len=240, key=jax.random.PRNGKey(0)):
    position = jnp.arange(0.0, max_len, dtype=jnp.float32)[:, None]          # (max_len, 1)
    div_term = jnp.exp(
        jnp.arange(0, n_hid, 2, dtype=jnp.float32) * -(math.log(10000.0) / n_hid)
    )                                                                          # (n_hid//2,)
    emb = jnp.zeros((max_len, n_hid), dtype=jnp.float32)
    emb = emb.at[:, 0::2].set(jnp.sin(position * div_term) / math.sqrt(n_hid))
    emb = emb.at[:, 1::2].set(jnp.cos(position * div_term) / math.sqrt(n_hid))

    kw, kb = jax.random.split(key)
    bound = 1.0 / math.sqrt(n_hid)
    w = jax.random.uniform(kw, (n_hid, n_hid), jnp.float32, -bound, bound)    # (out, in)
    b = jax.random.uniform(kb, (n_hid,), jnp.float32, -bound, bound)
    return emb, w, b


# --------------------------------------------------------------------------
# Main
# --------------------------------------------------------------------------
if __name__ == "__main__":
    N = 8          # number of nodes / rows
    N_HID = 32
    MAX_LEN = 240

    key = jax.random.PRNGKey(0)
    k_x, k_t, k_p = jax.random.split(key, 3)

    x = jax.random.normal(k_x, (N, N_HID), dtype=jnp.float32)
    t = jax.random.randint(k_t, (N,), 0, MAX_LEN, dtype=jnp.int32)

    emb_table, w, b = build_params(N_HID, MAX_LEN, k_p)

    out = rel_temporal_encoding(x, t, emb_table, w, b)
    out = jax.block_until_ready(out)

    # Reference (pure JAX) to validate semantics: x + lin(emb(t)).
    e_t = jnp.take(emb_table, t, axis=0)
    ref = x + e_t @ w.T + b
    assert out.shape == (N, N_HID)
    assert jnp.allclose(out, ref, atol=1e-4, rtol=1e-4), float(jnp.max(jnp.abs(out - ref)))

    print("KERNEL_OK")
</pallas_src>

<mosaic_0001>
module attributes {stable_mosaic.version = 11 : i64} {
  func.func @_rte_kernel(%arg0: i32, %arg1: memref<8x128xf32, #tpu.memory_space<vmem>>, %arg2: memref<8x1xi32, #tpu.memory_space<vmem>>, %arg3: memref<240x128xf32, #tpu.memory_space<vmem>>, %arg4: memref<128x128xf32, #tpu.memory_space<vmem>>, %arg5: memref<1x128xf32, #tpu.memory_space<vmem>>, %arg6: memref<8x128xf32, #tpu.memory_space<vmem>>) attributes {dimension_semantics = [#tpu.dimension_semantics<parallel>], iteration_bounds = array<i64: 1>, scalar_prefetch = 0 : i64, scratch_operands = 0 : i64, tpu.core_type = #tpu.core_type<tc>, window_params = [{transform_indices = @transform_0, window_bounds = array<i64: 8, 128>}, {transform_indices = @transform_1, window_bounds = array<i64: 8, 1>}, {pipeline_mode = #tpu.pipeline_mode<synchronous>, transform_indices = @transform_2, window_bounds = array<i64: 240, 128>}, {pipeline_mode = #tpu.pipeline_mode<synchronous>, transform_indices = @transform_3, window_bounds = array<i64: 128, 128>}, {pipeline_mode = #tpu.pipeline_mode<synchronous>, transform_indices = @transform_4, window_bounds = array<i64: 1, 128>}, {transform_indices = @transform_5, window_bounds = array<i64: 8, 128>}]} {
    %c0 = arith.constant 0 : index
    %c0_0 = arith.constant 0 : index
    %0 = vector.load %arg2[%c0, %c0_0] : memref<8x1xi32, #tpu.memory_space<vmem>>, vector<8x1xi32>
    %1 = tpu.iota {dimensions = array<i32: 1>} : vector<8x240xi32>
    %2 = vector.broadcast %0 : vector<8x1xi32> to vector<8x240xi32>
    %3 = arith.cmpi eq, %1, %2 : vector<8x240xi32>
    %cst = arith.constant 1.000000e+00 : f32
    %cst_1 = arith.constant 0.000000e+00 : f32
    %4 = vector.broadcast %cst : f32 to vector<8x240xf32>
    %5 = vector.broadcast %cst_1 : f32 to vector<8x240xf32>
    %6 = arith.select %3, %4, %5 : vector<8x240xi1>, vector<8x240xf32>
    %c0_2 = arith.constant 0 : index
    %c0_3 = arith.constant 0 : index
    %7 = vector.load %arg3[%c0_2, %c0_3] : memref<240x128xf32, #tpu.memory_space<vmem>>, vector<240x128xf32>
    %cst_4 = arith.constant dense<0.000000e+00> : vector<8x128xf32>
    %8 = tpu.matmul %6, %7, %cst_4 {dimension_numbers = #tpu.dot_dimension_numbers<[1], [0], [0], [1], [0, 0, 1, 1], [], []>} : vector<8x240xf32>, vector<240x128xf32>, vector<8x128xf32> -> vector<8x128xf32>
    %c0_5 = arith.constant 0 : index
    %c0_6 = arith.constant 0 : index
    %9 = vector.load %arg4[%c0_5, %c0_6] : memref<128x128xf32, #tpu.memory_space<vmem>>, vector<128x128xf32>
    %cst_7 = arith.constant dense<0.000000e+00> : vector<8x128xf32>
    %10 = tpu.matmul %8, %9, %cst_7 {dimension_numbers = #tpu.dot_dimension_numbers<[1], [0], [0], [1], [0, 0, 1, 1], [], []>} : vector<8x128xf32>, vector<128x128xf32>, vector<8x128xf32> -> vector<8x128xf32>
    %c0_8 = arith.constant 0 : index
    %c0_9 = arith.constant 0 : index
    %11 = vector.load %arg1[%c0_8, %c0_9] : memref<8x128xf32, #tpu.memory_space<vmem>>, vector<8x128xf32>
    %12 = arith.addf %11, %10 : vector<8x128xf32>
    %c0_10 = arith.constant 0 : index
    %c0_11 = arith.constant 0 : index
    %13 = vector.load %arg5[%c0_10, %c0_11] : memref<1x128xf32, #tpu.memory_space<vmem>>, vector<1x128xf32>
    %14 = vector.broadcast %13 : vector<1x128xf32> to vector<8x128xf32>
    %15 = arith.addf %12, %14 : vector<8x128xf32>
    %c0_12 = arith.constant 0 : index
    %c0_13 = arith.constant 0 : index
    %16 = vector.load %arg6[%c0_12, %c0_13] : memref<8x128xf32, #tpu.memory_space<vmem>>, vector<8x128xf32>
    tpu.vector_store %arg6[%c0_12, %c0_13], %15 {strides = array<i32>} : memref<8x128xf32, #tpu.memory_space<vmem>>, vector<8x128xf32>,
    return
  }
  func.func @transform_0(%arg0: i32) -> (i32, i32) {
    %c0_i32 = arith.constant 0 : i32
    %c0_i32_0 = arith.constant 0 : i32
    return %arg0, %c0_i32 : i32, i32
  }
  func.func @transform_1(%arg0: i32) -> (i32, i32) {
    %c0_i32 = arith.constant 0 : i32
    %c0_i32_0 = arith.constant 0 : i32
    return %arg0, %c0_i32 : i32, i32
  }
  func.func @transform_2(%arg0: i32) -> (i32, i32) {
    %c0_i32 = arith.constant 0 : i32
    %c0_i32_0 = arith.constant 0 : i32
    %c0_i32_1 = arith.constant 0 : i32
    return %c0_i32, %c0_i32_0 : i32, i32
  }
  func.func @transform_3(%arg0: i32) -> (i32, i32) {
    %c0_i32 = arith.constant 0 : i32
    %c0_i32_0 = arith.constant 0 : i32
    %c0_i32_1 = arith.constant 0 : i32
    return %c0_i32, %c0_i32_0 : i32, i32
  }
  func.func @transform_4(%arg0: i32) -> (i32, i32) {
    %c0_i32 = arith.constant 0 : i32
    %c0_i32_0 = arith.constant 0 : i32
    %c0_i32_1 = arith.constant 0 : i32
    return %c0_i32, %c0_i32_0 : i32, i32
  }
  func.func @transform_5(%arg0: i32) -> (i32, i32) {
    %c0_i32 = arith.constant 0 : i32
    %c0_i32_0 = arith.constant 0 : i32
    return %arg0, %c0_i32 : i32, i32
  }
}

</mosaic_0001>

<bundles_post_ra>
// kernel: tpu_custom_call.1
= control target key start
LH: loop header
LB: loop body
LE: loop exit
PB: predicated region body
PF: predicated region fallthrough
CT: control target
= control target key end

     0   :  { %10 = vsyncpa [#allocation3], 0  ;;  %s592_s0 = inlined_call_operand.vmem [shape: f32[8,128], index: 0, kind: input, shape index: {}]   ;;  %s593_s1 = inlined_call_operand.vmem [shape: s32[8,1], index: 1, kind: input, shape index: {}]   ;;  %s594_s2 = inlined_call_operand.hbm [shape: f32[240,128], index: 2, kind: input, shape index: {}]   ;;  %s595_s3 = inlined_call_operand.hbm [shape: f32[128,128], index: 3, kind: input, shape index: {}]   ;;  %s596_s4 = inlined_call_operand.vmem [shape: f32[1,128], index: 4, kind: input, shape index: {}]   ;;  %s597_s5 = inlined_call_operand.hbm [shape: f32[8,128], index: 5, kind: output, shape index: {}]  }
   0x1   :  { %11 = vsyncpa [#allocation6], 0 }
   0x2   :  { %12 = vsyncpa [#allocation4], 0  ;;  %s484_s18 = smov [#allocation2]   ;;  %s412_s22 = scalar_lea.hbm %s594_s2, 3840 }
   0x3   :  { %s22_s19 = sshll.u32 %s484_s18, 4  ;;  %p413_p0 = scmp.ne.s32.totalorder %s594_s2, %s412_s22  ;;  %s23_s19 = int_to_ptr.vmem [resolvable:$true] %s22_s19 }
   0x4   :  { %p416_p1 = scmp.lt.u32.totalorder %s412_s22, %s594_s2 }
   0x6   :  { %p418_p2 = pnand %p416_p1, %p413_p0 }
   0x8   :  { %421 = shalt.err (!%p418_p2)
}
   0x9   :  { %s422_s27 = scalar_lea.vmem %s23_s19, 3840  ;;  %p427_p4 = scmp.lt.s32.totalorder %s23_s19, %s23_s19 }
   0xa   :  { %p423_p3 = scmp.ne.s32.totalorder %s23_s19, %s422_s27  ;;  %p428_p5 = scmp.lt.s32.totalorder %s422_s27, %s422_s27 }
   0xc   :  { %p429_p6 = por %p428_p5, %p427_p4 }
   0xe   :  { %p430_p7 = pnand %p429_p6, %p423_p3 }
  0x10   :  { %433 = shalt.err (!%p430_p7)
}
  0x11   :  { %s485_s28 = smov 128   ;;  %s486_s29 = smov 8  }
  0x12   :  { %28 = dma.hbm_to_vmem [thread:$0]  %s594_s2, 3840, %s23_s19, [#allocation3], %s485_s28, %s485_s28, %s486_s29  }
  0x13   :  { %s487_s7 = smov [#allocation5]   ;;  %s434_s11 = scalar_lea.hbm %s595_s3, 2048 }
  0x14   :  { %s34_s8 = sshll.u32 %s487_s7, 4  ;;  %p435_p8 = scmp.ne.s32.totalorder %s595_s3, %s434_s11  ;;  %s35_s8 = int_to_ptr.vmem [resolvable:$true] %s34_s8 }
  0x15   :  { %p438_p9 = scmp.lt.u32.totalorder %s434_s11, %s595_s3 }
  0x17   :  { %p440_p10 = pnand %p438_p9, %p435_p8 }
  0x19   :  { %443 = shalt.err (!%p440_p10)
}
  0x1a   :  { %s444_s16 = scalar_lea.vmem %s35_s8, 2048  ;;  %p449_p12 = scmp.lt.s32.totalorder %s35_s8, %s35_s8 }
  0x1b   :  { %p445_p11 = scmp.ne.s32.totalorder %s35_s8, %s444_s16  ;;  %p450_p13 = scmp.lt.s32.totalorder %s444_s16, %s444_s16 }
  0x1d   :  { %p451_p0 = por %p450_p13, %p449_p12 }
  0x1f   :  { %p452_p1 = pnand %p451_p0, %p445_p11 }
  0x21   :  { %455 = shalt.err (!%p452_p1)
}
  0x22   :  { %40 = dma.hbm_to_vmem [thread:$0]  %s595_s3, 2048, %s35_s8, [#allocation6], %s485_s28, %s485_s28, %s486_s29  }
  0x23   :  { %478 = dma.done.wait [#allocation3], 3840  }
  0x24   :  { %479 = vsyncadd [#allocation3], 4294963456 }
  0x25   :  { %480 = dma.done.wait [#allocation6], 2048  }
  0x26   :  { %481 = vsyncadd [#allocation6], 4294965248  ;;  %v488_v0 = vmov 0   ;;  %v489_v1 = vmov 0.0|0.0   ;;  %v49_v2 = vld [vmem:[%s593_s1] sm:$0xff]  ;;  %v61_v4 = vld [vmem:[#allocation2 + $0x8] sm:$0xff] }
  0x27   :  { %411 = vset.pattern.permute.xlu0 %v488_v0  ;;  %332 = vmatprep.subr.bf16.mxu0 %v489_v1  ;;  %v60_v3 = vld [vmem:[#allocation2] sm:$0xff]  ;;  %v62_v6 = vld [vmem:[#allocation2 + $0x10] sm:$0xff]  ;;  %v63_v7 = vld [vmem:[#allocation2 + $0x18] sm:$0xff]  ;;  %vm90_vm0 = vcmask 916480   ;;  %vm492_vm3 = vmmov 0   ;;  %s493_s22 = smov [#allocation7]  }
  0x28   :  { %377 = vmatprep.subr.bf16.mxu1 %v489_v1  ;;  %54 = vperm.xlu0 %411, %v49_v2   ;;  %v333_v5 = vpack.c.bf16 %v61_v4, %v60_v3  ;;  %v336_v8 = vpack.c.bf16 %v63_v7, %v62_v6  ;;  %v64_v9 = vld [vmem:[#allocation2 + $0x20] sm:$0xff]  ;;  %v65_v10 = vld [vmem:[#allocation2 + $0x28] sm:$0xff]  ;;  %v66_v12 = vld [vmem:[#allocation2 + $0x30] sm:$0xff]  ;;  %s267_s23 = sshll.u32 %s493_s22, 4  ;;  %s268_s23 = int_to_ptr.vmem [resolvable:$true] %s267_s23 }
  0x29   :  { %v339_v11 = vpack.c.bf16 %v65_v10, %v64_v9  ;;  %v67_v13 = vld [vmem:[#allocation2 + $0x38] sm:$0xff]  ;;  %v164_v14 = vld [vmem:[#allocation5] sm:$0xff]  ;;  %v166_v18 = vld [vmem:[#allocation5 + $0x10] sm:$0xff]  ;;  %v50_v9 = vlaneseq  ;;  %s456_s24 = scalar_lea.vmem %s268_s23, 128  ;;  %p461_p3 = scmp.lt.s32.totalorder %s268_s23, %s268_s23 }
  0x2a   :  { %334 = vmatpush1.bf16.msra.mxu0 %v333_v5  ;;  %v165_v15 = vld [vmem:[#allocation5 + $0x8] sm:$0xff]  ;;  %v342_v16 = vpack.c.bf16 %v67_v13, %v66_v12  ;;  %v167_v19 = vld [vmem:[#allocation5 + $0x18] sm:$0xff]  ;;  %v68_v20 = vld [vmem:[#allocation2 + $0x40] sm:$0xff]  ;;  %v490_v13 = vmov 0.0   ;;  %p457_p2 = scmp.ne.s32.totalorder %s268_s23, %s456_s24  ;;  %p462_p4 = scmp.lt.s32.totalorder %s456_s24, %s456_s24 }
  0x2b   :  { %335 = vmatprep.subr.bf16.mxu0 %v489_v1  ;;  %v378_v17 = vpack.c.bf16 %v165_v15, %v164_v14  ;;  %v69_v21 = vld [vmem:[#allocation2 + $0x48] sm:$0xff]  ;;  %v381_v22 = vpack.c.bf16 %v167_v19, %v166_v18  ;;  %v168_v23 = vld [vmem:[#allocation5 + $0x20] sm:$0xff]  ;;  %v169_v24 = vld [vmem:[#allocation5 + $0x28] sm:$0xff]  ;;  %v51_v10 = vand.u32 127, %v50_v9  ;;  %v491_v15 = vmov 1.0   ;;  %329 = vmatprep.mubr.msk.f32.mxu1 %vm492_vm3, %v490_v13 }
  0x2c   :  { %v345_v25 = vpack.c.bf16 %v69_v21, %v68_v20  ;;  %v70_v26 = vld [vmem:[#allocation2 + $0x50] sm:$0xff]  ;;  %v71_v27 = vld [vmem:[#allocation2 + $0x58] sm:$0xff]  ;;  %v384_v28 = vpack.c.bf16 %v169_v24, %v168_v23  ;;  %v170_v29 = vld [vmem:[#allocation5 + $0x30] sm:$0xff]  ;;  %p463_p5 = por %p462_p4, %p461_p3 }
  0x2d   :  { %379 = vmatpush3.bf16.msra.mxu1 %v378_v17  ;;  %v171_v30 = vld [vmem:[#allocation5 + $0x38] sm:$0xff]  ;;  %v348_v31 = vpack.c.bf16 %v71_v27, %v70_v26  ;;  %v72_v32 = vld [vmem:[#allocation2 + $0x60] sm:$0xff]  ;;  %v172_v35 = vld [vmem:[#allocation5 + $0x40] sm:$0xff] }
  0x2e   :  { %337 = vmatpush1.bf16.msra.mxu0 %v336_v8  ;;  %380 = vmatprep.subr.bf16.mxu1 %v489_v1  ;;  %v73_v33 = vld [vmem:[#allocation2 + $0x68] sm:$0xff]  ;;  %v387_v34 = vpack.c.bf16 %v171_v30, %v170_v29  ;;  %v173_v36 = vld [vmem:[#allocation5 + $0x48] sm:$0xff]  ;;  %v74_v38 = vld [vmem:[#allocation2 + $0x70] sm:$0xff]  ;;  %p464_p6 = pnand %p463_p5, %p457_p2 }
  0x2f   :  { %338 = vmatprep.subr.bf16.mxu0 %v489_v1  ;;  %v351_v37 = vpack.c.bf16 %v73_v33, %v72_v32  ;;  %v75_v39 = vld [vmem:[#allocation2 + $0x78] sm:$0xff]  ;;  %v390_v40 = vpack.c.bf16 %v173_v36, %v172_v35  ;;  %v174_v41 = vld [vmem:[#allocation5 + $0x50] sm:$0xff]  ;;  %v175_v42 = vld [vmem:[#allocation5 + $0x58] sm:$0xff] }
  0x30   :  { %v354_v43 = vpack.c.bf16 %v75_v39, %v74_v38  ;;  %v76_v44 = vld [vmem:[#allocation2 + $0x80] sm:$0xff]  ;;  %v77_v45 = vld [vmem:[#allocation2 + $0x88] sm:$0xff]  ;;  %v393_v46 = vpack.c.bf16 %v175_v42, %v174_v41  ;;  %v176_v47 = vld [vmem:[#allocation5 + $0x60] sm:$0xff] }
  0x31   :  { %382 = vmatpush3.bf16.msra.mxu1 %v381_v22  ;;  %v177_v48 = vld [vmem:[#allocation5 + $0x68] sm:$0xff]  ;;  %v357_v49 = vpack.c.bf16 %v77_v45, %v76_v44  ;;  %v78_v50 = vld [vmem:[#allocation2 + $0x90] sm:$0xff]  ;;  %v178_v53 = vld [vmem:[#allocation5 + $0x70] sm:$0xff] }
  0x32   :  { %340 = vmatpush1.bf16.msra.mxu0 %v339_v11  ;;  %383 = vmatprep.subr.bf16.mxu1 %v489_v1  ;;  %v79_v51 = vld [vmem:[#allocation2 + $0x98] sm:$0xff]  ;;  %v396_v52 = vpack.c.bf16 %v177_v48, %v176_v47  ;;  %v179_v54 = vld [vmem:[#allocation5 + $0x78] sm:$0xff]  ;;  %v80_v56 = vld [vmem:[#allocation2 + $0xa0] sm:$0xff]  ;;  %v52_v11 = vadd.s32 128, %v51_v10 }
  0x33   :  { %341 = vmatprep.subr.bf16.mxu0 %v489_v1  ;;  %v360_v55 = vpack.c.bf16 %v79_v51, %v78_v50  ;;  %v81_v57 = vld [vmem:[#allocation2 + $0xa8] sm:$0xff]  ;;  %v399_v58 = vpack.c.bf16 %v179_v54, %v178_v53  ;;  %v82_v60 = vld [vmem:[#allocation2 + $0xb0] sm:$0xff]  ;;  %v83_v61 = vld [vmem:[#allocation2 + $0xb8] sm:$0xff] }
  0x34   :  { %v363_v59 = vpack.c.bf16 %v81_v57, %v80_v56  ;;  %v366_v62 = vpack.c.bf16 %v83_v61, %v82_v60  ;;  %v84_v63 = vld [vmem:[#allocation2 + $0xc0] sm:$0xff]  ;;  %v85_v0 = vld [vmem:[#allocation2 + $0xc8] sm:$0xff]  ;;  %v86_v3 = vld [vmem:[#allocation2 + $0xd0] sm:$0xff] }
  0x35   :  { %385 = vmatpush3.bf16.msra.mxu1 %v384_v28  ;;  %v369_v2 = vpack.c.bf16 %v85_v0, %v84_v63  ;;  %v87_v4 = vld [vmem:[#allocation2 + $0xd8] sm:$0xff]  ;;  %v88_v6 = vld [vmem:[#allocation2 + $0xe0] sm:$0xff]  ;;  %v89_v7 = vld [vmem:[#allocation2 + $0xe8] sm:$0xff] }
  0x36   :  { %343 = vmatpush1.bf16.msra.mxu0 %v342_v16  ;;  %386 = vmatprep.subr.bf16.mxu1 %v489_v1  ;;  %v372_v5 = vpack.c.bf16 %v87_v4, %v86_v3  ;;  %v375_v8 = vpack.c.bf16 %v89_v7, %v88_v6  ;;  %v279_v19 = vld [vmem:[%s596_s4] ss:$0 sm:$0xff] }
  0x37   :  { %344 = vmatprep.subr.bf16.mxu0 %v489_v1 }
  0x39   :  { %388 = vmatpush3.bf16.msra.mxu1 %v387_v34 }
  0x3a   :  { %346 = vmatpush1.bf16.msra.mxu0 %v345_v25  ;;  %389 = vmatprep.subr.bf16.mxu1 %v489_v1 }
  0x3b   :  { %347 = vmatprep.subr.bf16.mxu0 %v489_v1 }
  0x3d   :  { %391 = vmatpush3.bf16.msra.mxu1 %v390_v40 }
  0x3e   :  { %349 = vmatpush1.bf16.msra.mxu0 %v348_v31  ;;  %392 = vmatprep.subr.bf16.mxu1 %v489_v1 }
  0x3f   :  { %350 = vmatprep.subr.bf16.mxu0 %v489_v1 }
  0x41   :  { %394 = vmatpush3.bf16.msra.mxu1 %v393_v46 }
  0x42   :  { %352 = vmatpush1.bf16.msra.mxu0 %v351_v37  ;;  %395 = vmatprep.subr.bf16.mxu1 %v489_v1 }
  0x43   :  { %353 = vmatprep.subr.bf16.mxu0 %v489_v1 }
  0x45   :  { %397 = vmatpush3.bf16.msra.mxu1 %v396_v52 }
  0x46   :  { %355 = vmatpush1.bf16.msra.mxu0 %v354_v43  ;;  %398 = vmatprep.subr.bf16.mxu1 %v489_v1 }
  0x47   :  { %356 = vmatprep.subr.bf16.mxu0 %v489_v1 }
  0x49   :  { %400 = vmatpush3.bf16.msra.mxu1 %v399_v58 }
  0x4a   :  { %358 = vmatpush1.bf16.msra.mxu0 %v357_v49 }
  0x4b   :  { %359 = vmatprep.subr.bf16.mxu0 %v489_v1 }
  0x4e   :  { %361 = vmatpush1.bf16.msra.mxu0 %v360_v55 }
  0x4f   :  { %362 = vmatprep.subr.bf16.mxu0 %v489_v1 }
  0x52   :  { %364 = vmatpush1.bf16.msra.mxu0 %v363_v59 }
  0x53   :  { %365 = vmatprep.subr.bf16.mxu0 %v489_v1 }
  0x56   :  { %367 = vmatpush1.bf16.msra.mxu0 %v366_v62 }
  0x57   :  { %368 = vmatprep.subr.bf16.mxu0 %v489_v1 }
  0x5a   :  { %370 = vmatpush1.bf16.msra.mxu0 %v369_v2 }
  0x5b   :  { %371 = vmatprep.subr.bf16.mxu0 %v489_v1 }
  0x5e   :  { %373 = vmatpush1.bf16.msra.mxu0 %v372_v5 }
  0x5f   :  { %374 = vmatprep.subr.bf16.mxu0 %v489_v1  ;;  %v250_v1 = vld [vmem:[%s592_s0] sm:$0xff] }
  0x62   :  { %376 = vmatpush1.bf16.msra.mxu0 %v375_v8 }
  0xa7   :  { %v55_v12 = vpop.permute.xlu0 %54 }
  0xa8   :  { %vm57_vm1 = vcmp.eq.s32.totalorder %v52_v11, %v55_v12  ;;  %vm56_vm2 = vcmp.eq.s32.totalorder %v51_v10, %v55_v12 }
  0xa9   :  { %v59_v14 = vsel %vm57_vm1, 1.0, %v490_v13 }
  0xaa   :  { %277 = vmatprep.mubr.msk.f32.mxu0 %vm90_vm0, %v59_v14 }
  0xab   :  { %278 = vmatmul.mubr.msk.f32.vlgmr.msra.gmra.mrb[0].mxu0 %vm56_vm2, %v491_v15 }
 0x17e   :  { %v160_v16 = vpop.f32.mrb[0].mxu0 }
 0x17f   :  { %v162_v17 = vpop.f32.mrb[1].mxu0  ;;  %330 = vmatmul.mubr.f32.vlgmr.msra.gmra.mrb[0].mxu1 %v160_v16 }
 0x252   :  { %v246_v18 = vpop.f32.mrb[0].mxu1 }
 0x253   :  { %v251_v20 = vadd.f32 %v250_v1, %v246_v18  ;;  %v331_v21 = vpop.f32.mrb[1].mxu1 }
 0x255   :  { %v259_v22 = vadd.f32 %v279_v19, %v251_v20 }
 0x257   :  { %260 = vst [vmem:[#allocation7] sm:$0xff] %v259_v22 }
 0x258   :  { %467 = shalt.err (!%p464_p6)
}
 0x259   :  { %s468_s26 = scalar_lea.hbm %s597_s5, 128 }
 0x25a   :  { %p469_p7 = scmp.ne.s32.totalorder %s597_s5, %s468_s26  ;;  %p472_p8 = scmp.lt.u32.totalorder %s468_s26, %s597_s5 }
 0x25c   :  { %p474_p9 = pnand %p472_p8, %p469_p7 }
 0x25e   :  { %477 = shalt.err (!%p474_p9)
}
 0x25f   :  { %270 = dma.vmem_to_hbm [thread:$0]  %s268_s23, 128, %s597_s5, [#allocation4]  }
 0x260   :  { %482 = dma.done.wait [#allocation4], 128  }
 0x261   :  { %483 = vsyncadd [#allocation4], 4294967168 }
 0x262   :  { %274 = vsyncpa [#allocation3], 1 }
 0x263   :  { %275 = vsyncpa [#allocation6], 1 }
 0x264   :  { %276 = vsyncpa [#allocation4], 1 }

</bundles_post_ra>
